<compile_context>
chip_gen: v7x
topology: tpu7x:2x2x1
jax: 0.10.0
libtpu: 0.0.40
codegen_flags: <defaults>
</compile_context>

<pallas_src>
import math
import functools

import jax
import jax.numpy as jnp
from jax.experimental import pallas as pl
from jax.experimental.pallas import tpu as pltpu


_VMEM_LIMIT = 32 * 1024 * 1024  # within scoped-VMEM budget on v5e/v6e/v7x
_SMEM_SPEC = pl.BlockSpec(memory_space=pltpu.MemorySpace.SMEM)


def _cdiv(a, b):
    return -(-a // b)


def _row_tile(n_rows, width, target_bytes=2 * 1024 * 1024):
    """Large row tile (~2 MiB f32, multiple of 8) for the (n_rows, width) stream."""
    cap = max(8, (target_bytes // (width * 4)) // 8 * 8)
    if n_rows <= cap:
        return n_rows            # full-extent block is always legal
    return cap


def _angle_tile(n_angles, width, target_bytes=4 * 1024 * 1024):
    """Ring pass angle tile: full A when it fits, else a divisor of A (mult. of 8)."""
    if n_angles * width * 4 <= target_bytes:
        return n_angles
    for ta in range(n_angles, 0, -1):
        if n_angles % ta == 0 and ta % 8 == 0 and ta * width * 4 <= target_bytes:
            return ta
    return n_angles


# ---------------- Pallas kernels ----------------

def _emit_partials(part_ref, ym):
    """Write (sum, sumsq) of the shifted tile into lanes 0/1 of a (1,8,128) block."""
    s1 = jnp.sum(ym)
    s2 = jnp.sum(ym * ym)
    r = jax.lax.broadcasted_iota(jnp.int32, (8, 128), 0)
    c = jax.lax.broadcasted_iota(jnp.int32, (8, 128), 1)
    blk = jnp.where((r == 0) & (c == 0), s1,
                    jnp.where((r == 0) & (c == 1), s2, jnp.float32(0.0)))
    part_ref[...] = blk[None, :, :]


def _moments(part_ref, y, shift, *, n_rows, tile_rows):
    """Shifted partial moments; only a ragged last block pays for masking."""
    pid = pl.program_id(0)
    if n_rows % tile_rows:                       # static: grid has a ragged tail
        last = pl.num_programs(0) - 1

        @pl.when(pid != last)
        def _full():
            _emit_partials(part_ref, y - shift)

        @pl.when(pid == last)
        def _ragged():
            rows = jax.lax.broadcasted_iota(jnp.int32, y.shape, 0)
            valid = (pid * tile_rows + rows) < n_rows
            _emit_partials(part_ref, jnp.where(valid, y - shift, 0.0))
    else:
        _emit_partials(part_ref, y - shift)


def _noise_approx_kernel(params_ref, x_ref, z_ref, y_ref, part_ref, *,
                         photon, sqrt_photon, log_photon, n_rows, tile_rows):
    """Fused: attenuate -> Poisson(Gaussian approx) -> log domain + moments."""
    sf = params_ref[0]
    inv_sf = params_ref[1]          # hoisted scalar reciprocal: no per-elem divide
    shift = params_ref[2]           # ~E[y]; shifted moments avoid f32 cancellation

    x = x_ref[...]
    half = jnp.exp(x * (sf * -0.5))          # single EUP exp per element
    lam = (half * half) * photon             # photon * exp(-sf*x)
    sqrt_lam = half * sqrt_photon            # sqrt(lam) without a sqrt (VPU muls)
    # max(.,1) covers both the clamp at zero and the original data[data==0] = 1
    counts = jnp.maximum(jnp.floor(lam + sqrt_lam * z_ref[...] + 0.5), 1.0)
    y = (log_photon - jnp.log(counts)) * inv_sf
    y_ref[...] = y

    _moments(part_ref, y, shift, n_rows=n_rows, tile_rows=tile_rows)


def _noise_exact_kernel(params_ref, counts_ref, y_ref, part_ref, *,
                        log_photon, n_rows, tile_rows):
    """Exact path: integer Poisson counts -> log domain + moments."""
    inv_sf = params_ref[1]
    shift = params_ref[2]

    c = jnp.maximum(counts_ref[...].astype(jnp.float32), 1.0)   # data[data==0] = 1
    y = (log_photon - jnp.log(c)) * inv_sf
    y_ref[...] = y

    _moments(part_ref, y, shift, n_rows=n_rows, tile_rows=tile_rows)


def _ring_kernel(y_ref, ring_ref, o_ref):
    # y_ref: (1, ta, W); ring_ref: (1, 1, W) broadcast over angles; in-place add.
    o_ref[...] = y_ref[...] + ring_ref[...]


# ---------------- wrapper ----------------

def poisson_noise_ring(data, key, *, transmittance_rate, photon_count,
                       bad_pixel_ratio, scale=1.0, method="auto"):
    data = data.astype(jnp.float32)
    B, A, W = data.shape
    R = B * A
    N = R * W
    photon = float(photon_count)
    log_photon = float(math.log(photon))
    sqrt_photon = float(math.sqrt(photon))

    if method == "auto":
        method = "approx" if photon >= 1e3 else "exact"
    if method not in ("approx", "exact"):
        raise ValueError(f"unknown method {method!r}")

    # ---- attenuation (scale) factor from mean(data) (XLA reduction; roofline)
    mean = jnp.mean(data)
    safe_mean = jnp.where(mean == 0.0, 1.0, mean)
    sf = jnp.where(mean == 0.0, 1.0, -math.log(transmittance_rate) / safe_mean)
    params = jnp.stack([sf, 1.0 / sf, mean]).astype(jnp.float32)

    k_z, k_pois, k_perm, k_ring = jax.random.split(key, 4)

    # ---- pass A: noisy log-domain sinogram + per-block moments (fused)
    x2 = data.reshape(R, W)                       # free reshape (row-major)
    tile_rows = _row_tile(R, W)
    grid_rows = _cdiv(R, tile_rows)
    row_spec = pl.BlockSpec((tile_rows, W), lambda i: (i, 0))
    part_spec = pl.BlockSpec((1, 8, 128), lambda i: (i, 0, 0))
    out_shapes = (jax.ShapeDtypeStruct((R, W), jnp.float32),
                  jax.ShapeDtypeStruct((grid_rows, 8, 128), jnp.float32))
    cparams = pltpu.CompilerParams(dimension_semantics=("parallel",),
                                   vmem_limit_bytes=_VMEM_LIMIT)

    if method == "approx":
        # TODO(synk): in-kernel pltpu PRNG (prng_seed/stateful_normal) would avoid
        # streaming z from HBM, but it has no interpret-mode lowering; normals are
        # generated in XLA instead.
        z2 = jax.random.normal(k_z, (R, W), jnp.float32)
        y2, parts = pl.pallas_call(
            functools.partial(_noise_approx_kernel, photon=photon,
                              sqrt_photon=sqrt_photon, log_photon=log_photon,
                              n_rows=R, tile_rows=tile_rows),
            grid=(grid_rows,),
            in_specs=[_SMEM_SPEC, row_spec, row_spec],
            out_specs=(row_spec, part_spec),
            out_shape=out_shapes,
            compiler_params=cparams,
        )(params, x2, z2)
    else:
        # TODO(synk): Pallas has no Poisson-sampling primitive; exact path samples
        # with jax.random.poisson in XLA (lambda computed in XLA so it fuses).
        lam = jnp.exp(-(x2 * sf)) * photon
        counts = jax.random.poisson(k_pois, lam, dtype=jnp.int32)
        y2, parts = pl.pallas_call(
            functools.partial(_noise_exact_kernel, log_photon=log_photon,
                              n_rows=R, tile_rows=tile_rows),
            grid=(grid_rows,),
            in_specs=[_SMEM_SPEC, row_spec],
            out_specs=(row_spec, part_spec),
            out_shape=out_shapes,
            compiler_params=cparams,
        )(params, counts)

    # torch.std() default: unbiased (correction = 1); shifted moments keep f32 ok.
    ysum = jnp.sum(parts[:, 0, 0])
    ysumsq = jnp.sum(parts[:, 0, 1])
    denom = max(N - 1, 1)
    var = jnp.maximum(ysumsq - ysum * ysum / N, 0.0) / denom
    data_std = jnp.sqrt(var)

    # ---- pass B: ring artifact (premultiplied noise*mask, broadcast over angles)
    num_bad = int(B * W * bad_pixel_ratio)
    mask = jnp.zeros((B * W,), jnp.float32).at[:num_bad].set(1.0)
    mask = jax.random.permutation(k_perm, mask).reshape(B, W)
    noise = jax.random.normal(k_ring, (B, W), jnp.float32) * scale * data_std
    ring = (noise * mask)[:, None, :]                      # (B, 1, W)

    y3 = y2.reshape(B, A, W)                               # free reshape
    ta = _angle_tile(A, W)
    out = pl.pallas_call(
        _ring_kernel,
        grid=(B, A // ta),
        in_specs=[pl.BlockSpec((1, ta, W), lambda b, a: (b, a, 0)),
                  pl.BlockSpec((1, 1, W), lambda b, a: (b, 0, 0))],
        out_specs=pl.BlockSpec((1, ta, W), lambda b, a: (b, a, 0)),
        out_shape=jax.ShapeDtypeStruct((B, A, W), jnp.float32),
        input_output_aliases={0: 0},                       # overwrite y in place
        compiler_params=pltpu.CompilerParams(
            dimension_semantics=("parallel", "parallel"),
            vmem_limit_bytes=_VMEM_LIMIT),
    )(y3, ring)
    return out


if __name__ == "__main__":
    key = jax.random.PRNGKey(0)
    k_data, k_op = jax.random.split(key)

    B, A, W = 2, 16, 16  # (batch, angles, detector width)
    data = jax.random.uniform(k_data, (B, A, W), jnp.float32, 0.1, 2.0)

    common = dict(transmittance_rate=0.2, photon_count=1e4,
                  bad_pixel_ratio=0.1, scale=1.0)

    run_approx = jax.jit(functools.partial(poisson_noise_ring,
                                           method="approx", **common))
    out_a = jax.block_until_ready(run_approx(data, k_op))

    run_exact = jax.jit(functools.partial(poisson_noise_ring,
                                          method="exact", **common))
    out_e = jax.block_until_ready(run_exact(data, k_op))

    for out in (out_a, out_e):
        assert out.shape == (B, A, W) and out.dtype == jnp.float32
        assert bool(jnp.all(jnp.isfinite(out)))
    print("KERNEL_OK")
</pallas_src>

<mosaic_0001>
module attributes {stable_mosaic.version = 11 : i64} {
  func.func @_noise_approx_kernel(%arg0: i32, %arg1: memref<3xf32, #tpu.memory_space<smem>>, %arg2: memref<32x16xf32, #tpu.memory_space<vmem>>, %arg3: memref<32x16xf32, #tpu.memory_space<vmem>>, %arg4: memref<32x16xf32, #tpu.memory_space<vmem>>, %arg5: memref<1x8x128xf32, #tpu.memory_space<vmem>>) attributes {dimension_semantics = [#tpu.dimension_semantics<parallel>], iteration_bounds = array<i64: 1>, scalar_prefetch = 0 : i64, scratch_operands = 0 : i64, tpu.core_type = #tpu.core_type<tc>, window_params = [{transform_indices = @transform_0, window_bounds = array<i64: 3>}, {transform_indices = @transform_1, window_bounds = array<i64: 32, 16>}, {transform_indices = @transform_2, window_bounds = array<i64: 32, 16>}, {transform_indices = @transform_3, window_bounds = array<i64: 32, 16>}, {transform_indices = @transform_4, window_bounds = array<i64: 1, 8, 128>}]} {
    %c0 = arith.constant 0 : index
    %0 = memref.load %arg1[%c0] : memref<3xf32, #tpu.memory_space<smem>>
    %c1 = arith.constant 1 : index
    %1 = memref.load %arg1[%c1] : memref<3xf32, #tpu.memory_space<smem>>
    %c2 = arith.constant 2 : index
    %2 = memref.load %arg1[%c2] : memref<3xf32, #tpu.memory_space<smem>>
    %c0_0 = arith.constant 0 : index
    %c0_1 = arith.constant 0 : index
    %3 = vector.load %arg2[%c0_0, %c0_1] : memref<32x16xf32, #tpu.memory_space<vmem>>, vector<32x16xf32>
    %cst = arith.constant -5.000000e-01 : f32
    %4 = arith.mulf %0, %cst : f32
    %5 = vector.broadcast %4 : f32 to vector<32x16xf32>
    %6 = arith.mulf %3, %5 : vector<32x16xf32>
    %7 = math.exp %6 : vector<32x16xf32>
    %8 = arith.mulf %7, %7 : vector<32x16xf32>
    %cst_2 = arith.constant 1.000000e+04 : f32
    %9 = vector.broadcast %cst_2 : f32 to vector<32x16xf32>
    %10 = arith.mulf %8, %9 : vector<32x16xf32>
    %cst_3 = arith.constant 1.000000e+02 : f32
    %11 = vector.broadcast %cst_3 : f32 to vector<32x16xf32>
    %12 = arith.mulf %7, %11 : vector<32x16xf32>
    %c0_4 = arith.constant 0 : index
    %c0_5 = arith.constant 0 : index
    %13 = vector.load %arg3[%c0_4, %c0_5] : memref<32x16xf32, #tpu.memory_space<vmem>>, vector<32x16xf32>
    %14 = arith.mulf %12, %13 : vector<32x16xf32>
    %15 = arith.addf %10, %14 : vector<32x16xf32>
    %cst_6 = arith.constant 5.000000e-01 : f32
    %16 = vector.broadcast %cst_6 : f32 to vector<32x16xf32>
    %17 = arith.addf %15, %16 : vector<32x16xf32>
    %18 = math.floor %17 : vector<32x16xf32>
    %cst_7 = arith.constant 1.000000e+00 : f32
    %19 = vector.broadcast %cst_7 : f32 to vector<32x16xf32>
    %20 = arith.maximumf %18, %19 : vector<32x16xf32>
    %21 = math.log %20 : vector<32x16xf32>
    %cst_8 = arith.constant 9.21034049 : f32
    %22 = vector.broadcast %cst_8 : f32 to vector<32x16xf32>
    %23 = arith.subf %22, %21 : vector<32x16xf32>
    %24 = vector.broadcast %1 : f32 to vector<32x16xf32>
    %25 = arith.mulf %23, %24 : vector<32x16xf32>
    %c0_9 = arith.constant 0 : index
    %c0_10 = arith.constant 0 : index
    %26 = vector.load %arg4[%c0_9, %c0_10] : memref<32x16xf32, #tpu.memory_space<vmem>>, vector<32x16xf32>
    tpu.vector_store %arg4[%c0_9, %c0_10], %25 {strides = array<i32>} : memref<32x16xf32, #tpu.memory_space<vmem>>, vector<32x16xf32>,
    %27 = vector.broadcast %2 : f32 to vector<32x16xf32>
    %28 = arith.subf %25, %27 : vector<32x16xf32>
    %29 = vector.shape_cast %28 : vector<32x16xf32> to vector<1x32x16xf32>
    %cst_11 = arith.constant dense<0.000000e+00> : vector<1xf32>
    %30 = vector.multi_reduction <add>, %29, %cst_11 [1, 2] : vector<1x32x16xf32> to vector<1xf32>
    %31 = vector.shape_cast %30 : vector<1xf32> to vector<1x1x1xf32>
    %32 = vector.extract %31[0, 0, 0] : f32 from vector<1x1x1xf32>
    %33 = arith.mulf %28, %28 : vector<32x16xf32>
    %34 = vector.shape_cast %33 : vector<32x16xf32> to vector<1x32x16xf32>
    %cst_12 = arith.constant dense<0.000000e+00> : vector<1xf32>
    %35 = vector.multi_reduction <add>, %34, %cst_12 [1, 2] : vector<1x32x16xf32> to vector<1xf32>
    %36 = vector.shape_cast %35 : vector<1xf32> to vector<1x1x1xf32>
    %37 = vector.extract %36[0, 0, 0] : f32 from vector<1x1x1xf32>
    %38 = tpu.iota {dimensions = array<i32: 0>} : vector<8x128xi32>
    %39 = tpu.iota {dimensions = array<i32: 1>} : vector<8x128xi32>
    %c0_i32 = arith.constant 0 : i32
    %40 = vector.broadcast %c0_i32 : i32 to vector<8x128xi32>
    %41 = arith.cmpi eq, %38, %40 : vector<8x128xi32>
    %c0_i32_13 = arith.constant 0 : i32
    %42 = vector.broadcast %c0_i32_13 : i32 to vector<8x128xi32>
    %43 = arith.cmpi eq, %39, %42 : vector<8x128xi32>
    %44 = arith.andi %41, %43 : vector<8x128xi1>
    %c0_i32_14 = arith.constant 0 : i32
    %45 = vector.broadcast %c0_i32_14 : i32 to vector<8x128xi32>
    %46 = arith.cmpi eq, %38, %45 : vector<8x128xi32>
    %c1_i32 = arith.constant 1 : i32
    %47 = vector.broadcast %c1_i32 : i32 to vector<8x128xi32>
    %48 = arith.cmpi eq, %39, %47 : vector<8x128xi32>
    %49 = arith.andi %46, %48 : vector<8x128xi1>
    %cst_15 = arith.constant 0.000000e+00 : f32
    %50 = vector.broadcast %37 : f32 to vector<8x128xf32>
    %51 = vector.broadcast %cst_15 : f32 to vector<8x128xf32>
    %52 = arith.select %49, %50, %51 : vector<8x128xi1>, vector<8x128xf32>
    %53 = vector.broadcast %32 : f32 to vector<8x128xf32>
    %54 = arith.select %44, %53, %52 : vector<8x128xi1>, vector<8x128xf32>
    %55 = vector.shape_cast %54 : vector<8x128xf32> to vector<1x8x128xf32>
    %c0_16 = arith.constant 0 : index
    %c0_17 = arith.constant 0 : index
    %c0_18 = arith.constant 0 : index
    %56 = vector.load %arg5[%c0_16, %c0_17, %c0_18] : memref<1x8x128xf32, #tpu.memory_space<vmem>>, vector<1x8x128xf32>
    tpu.vector_store %arg5[%c0_16, %c0_17, %c0_18], %55 {strides = array<i32>} : memref<1x8x128xf32, #tpu.memory_space<vmem>>, vector<1x8x128xf32>,
    return
  }
  func.func @transform_0(%arg0: i32) -> i32 {
    %c0_i32 = arith.constant 0 : i32
    %c0_i32_0 = arith.constant 0 : i32
    return %c0_i32 : i32
  }
  func.func @transform_1(%arg0: i32) -> (i32, i32) {
    %c0_i32 = arith.constant 0 : i32
    %c0_i32_0 = arith.constant 0 : i32
    return %arg0, %c0_i32 : i32, i32
  }
  func.func @transform_2(%arg0: i32) -> (i32, i32) {
    %c0_i32 = arith.constant 0 : i32
    %c0_i32_0 = arith.constant 0 : i32
    return %arg0, %c0_i32 : i32, i32
  }
  func.func @transform_3(%arg0: i32) -> (i32, i32) {
    %c0_i32 = arith.constant 0 : i32
    %c0_i32_0 = arith.constant 0 : i32
    return %arg0, %c0_i32 : i32, i32
  }
  func.func @transform_4(%arg0: i32) -> (i32, i32, i32) {
    %c0_i32 = arith.constant 0 : i32
    %c0_i32_0 = arith.constant 0 : i32
    %c0_i32_1 = arith.constant 0 : i32
    return %arg0, %c0_i32, %c0_i32_0 : i32, i32, i32
  }
}

module attributes {stable_mosaic.version = 11 : i64} {
  func.func @_ring_kernel(%arg0: i32, %arg1: i32, %arg2: memref<1x16x16xf32, #tpu.memory_space<vmem>>, %arg3: memref<1x1x16xf32, #tpu.memory_space<vmem>>, %arg4: memref<1x16x16xf32, #tpu.memory_space<vmem>>) attributes {dimension_semantics = [#tpu.dimension_semantics<parallel>, #tpu.dimension_semantics<parallel>], iteration_bounds = array<i64: 2, 1>, scalar_prefetch = 0 : i64, scratch_operands = 0 : i64, tpu.core_type = #tpu.core_type<tc>, window_params = [{transform_indices = @transform_0, window_bounds = array<i64: 1, 16, 16>}, {transform_indices = @transform_1, window_bounds = array<i64: 1, 1, 16>}, {transform_indices = @transform_2, window_bounds = array<i64: 1, 16, 16>}]} {
    %c0 = arith.constant 0 : index
    %c0_0 = arith.constant 0 : index
    %c0_1 = arith.constant 0 : index
    %0 = vector.load %arg2[%c0, %c0_0, %c0_1] : memref<1x16x16xf32, #tpu.memory_space<vmem>>, vector<1x16x16xf32>
    %c0_2 = arith.constant 0 : index
    %c0_3 = arith.constant 0 : index
    %c0_4 = arith.constant 0 : index
    %1 = vector.load %arg3[%c0_2, %c0_3, %c0_4] : memref<1x1x16xf32, #tpu.memory_space<vmem>>, vector<1x1x16xf32>
    %2 = vector.broadcast %1 : vector<1x1x16xf32> to vector<1x16x16xf32>
    %3 = arith.addf %0, %2 : vector<1x16x16xf32>
    %c0_5 = arith.constant 0 : index
    %c0_6 = arith.constant 0 : index
    %c0_7 = arith.constant 0 : index
    %4 = vector.load %arg4[%c0_5, %c0_6, %c0_7] : memref<1x16x16xf32, #tpu.memory_space<vmem>>, vector<1x16x16xf32>
    tpu.vector_store %arg4[%c0_5, %c0_6, %c0_7], %3 {strides = array<i32>} : memref<1x16x16xf32, #tpu.memory_space<vmem>>, vector<1x16x16xf32>,
    return
  }
  func.func @transform_0(%arg0: i32, %arg1: i32) -> (i32, i32, i32) {
    %c0_i32 = arith.constant 0 : i32
    %c0_i32_0 = arith.constant 0 : i32
    return %arg0, %arg1, %c0_i32 : i32, i32, i32
  }
  func.func @transform_1(%arg0: i32, %arg1: i32) -> (i32, i32, i32) {
    %c0_i32 = arith.constant 0 : i32
    %c0_i32_0 = arith.constant 0 : i32
    %c0_i32_1 = arith.constant 0 : i32
    return %arg0, %c0_i32, %c0_i32_0 : i32, i32, i32
  }
  func.func @transform_2(%arg0: i32, %arg1: i32) -> (i32, i32, i32) {
    %c0_i32 = arith.constant 0 : i32
    %c0_i32_0 = arith.constant 0 : i32
    return %arg0, %arg1, %c0_i32 : i32, i32, i32
  }
}

</mosaic_0001>

<bundles_post_ra>
// kernel: poisson_noise_ring.5
= control target key start
LH: loop header
LB: loop body
LE: loop exit
PB: predicated region body
PF: predicated region fallthrough
CT: control target
= control target key end

     0   :  { %7 = vsyncpa [#allocation3], 0  ;;  %s721_s0 = inlined_call_operand.hbm [shape: f32[2,16,16], index: 0, kind: input, shape index: {}, may-alias: {0,2}]   ;;  %s722_s1 = inlined_call_operand.vmem [shape: f32[2,1,16], index: 1, kind: input, shape index: {}]   ;;  %s723_s2 = inlined_call_operand.hbm [shape: f32[2,16,16], index: 2, kind: output, shape index: {}, may-alias: {0,2}]  }
   0x1   :  { %9 = vsyncpa [#allocation3 + $0x1], 0 }
   0x2   :  { %10 = vsyncpa [#allocation4], 0 }
   0x3   :  { %12 = vsyncpa [#allocation4 + $0x1], 0  ;;  %s541_s9 = smov 0   ;;  %s543_s10 = smov 0  }
   0x4   :  { %s545_s11 = smov 0   ;;  %s547_s12 = smov 0  }
   0x5   :  { %s549_s13 = smov 0   ;;  %s551_s14 = smov 0  }
   0x6 LB: > { %s322_s15 = sadd.s32 4294967295, %s518_s14   ;;  %s323_s16 = sadd.s32 4294967294, %s518_s14   ;;  %s518_s14 = sphi %s551_s14, %s18_s14   ;;  %s514_s13 = sphi %s549_s13, %s738_s13   ;;  %s510_s12 = sphi %s547_s12, %s737_s12   ;;  %s506_s11 = sphi %s545_s11, %s736_s11   ;;  %s502_s10 = sphi %s543_s10, %s735_s10   ;;  %s498_s9 = sphi %s541_s9, %s734_s9  }
   0x7   : > { %s30_s17 = sadd.s32 1, %s514_s13  ;;  %s39_s18 = sadd.s32 1, %s506_s11 }
   0x8   : > { %p32_p0 = scmp.ge.s32.totalorder %s30_s17, 2  ;;  %p46_p1 = scmp.ne.s32.totalorder %s506_s11, %s502_s10 }
   0x9   : > { %p47_p2 = scmp.eq.s32.totalorder %s518_s14, 0  ;;  %p52_p3 = scmp.ne.s32.totalorder %s502_s10, %s498_s9 }
   0xa   : > { %s740_s17 = smov (%p32_p0, %s30_s17), 0  ;;  %p53_p5 = scmp.eq.s32.totalorder %s322_s15, 0 }
   0xb   : > { %p582_p4 = por %p47_p2, %p46_p1  ;;  %s34_s20 = ssub.s32 %s514_s13, %s740_s17 }
   0xc   : > { %p104_p6 = scmp.eq.s32.totalorder %s322_s15, 1  ;;  %p37_p7 = scmp.eq.s32.totalorder %s34_s20, 0 }
   0xd   : > { %p588_p8 = por %p53_p5, %p52_p3  ;;  %p110_p10 = scmp.eq.s32.totalorder %s323_s16, 1 }
   0xe   : > { %p592_p9 = por %p104_p6, %p46_p1  ;;  %p352_p13 = scmp.lt.s32.totalorder %s518_s14, 2 }
   0xf   : > { %s597_s23 = scalar_select %p37_p7, %s506_s11, %s39_s18  }
  0x10   : > { %s727_s22 = scalar_select %p592_p9, 1, 0 }
  0x11   : > { %p599_p11 = por %p110_p10, %p52_p3  ;;  %s130_s25 = sand.u32 1, %s506_s11  }
  0x12   : > { %s326_s26 = sshll.u32 %s130_s25, 4  ;;  %s338_s27 = sshll.u32 %s514_s13, 8 }
  0x13   : > { %s728_s24 = scalar_select %p599_p11, 1, 0 }
  0x14   : > { %s610_s30 = scalar_lea.hbm %s721_s0, %s338_s27  ;;  %s134_s3 = scalar_lea.vmem [#allocation2], %s326_s26 }
  0x15   : > { %s143_s4 = sshll.u32 %s134_s3, 4  ;;  %p616_p0 = pnand %p352_p13, %p582_p4  ;;  %s612_s4 = int_to_ptr.vmem [resolvable:$true] %s143_s4 }
  0x16   : > { %s621_s6 = scalar_lea.sflag [#allocation3], %s130_s25  ;;  %s406_s7 = scalar_lea.hbm %s610_s30, 256 }
  0x17   : > { %p407_p2 = scmp.ne.s32.totalorder %s610_s30, %s406_s7  ;;  %p408_p3 = pneg %p616_p0 }
  0x18   : > { %s411_s16 = scalar_lea.hbm %s721_s0, 512  ;;  %p412_p4 = scmp.lt.u32.totalorder %s610_s30, %s721_s0 }
  0x19   : > { %p409_p5 = pnand %p408_p3, %p407_p2  ;;  %p413_p7 = scmp.lt.u32.totalorder %s411_s16, %s406_s7 }
  0x1a   : > { %p415_p13 = scmp.lt.u32.totalorder %s406_s7, %s610_s30 }
  0x1b   : > { %p410_p6 = pneg %p409_p5  ;;  %p414_p10 = por %p413_p7, %p412_p4 }
  0x1d   : > { %p416_p12 = por %p415_p13, %p414_p10 }
  0x1f   : > { %p417_p1 = pnand %p416_p12, %p410_p6 }
  0x21   : > { %420 = shalt.err (!%p417_p1)
}
  0x22   : > { %s421_s20 = scalar_lea.vmem %s612_s4, 256  ;;  %s520_s25 = smov [#allocation2]  }
  0x23   : > { %p422_p2 = scmp.ne.s32.totalorder %s612_s4, %s421_s20  ;;  %s426_s26 = sshll.u32 %s520_s25, 4  ;;  %s427_s26 = int_to_ptr.vmem [resolvable:$false] %s426_s26 }
  0x24   : > { %s428_s27 = scalar_lea.vmem %s427_s26, 512  ;;  %p429_p9 = scmp.lt.s32.totalorder %s612_s4, %s427_s26 }
  0x25   : > { %p424_p5 = pnand %p422_p2, %p408_p3  ;;  %p430_p4 = scmp.lt.s32.totalorder %s428_s27, %s421_s20 }
  0x27   : > { %p425_p11 = pneg %p424_p5  ;;  %p431_p7 = por %p430_p4, %p429_p9 }
  0x29   : > { %p432_p10 = pnand %p431_p7, %p425_p11 }
  0x2b   : > { %435 = shalt.err (!%p432_p10)
}
  0x2c   : > { %s521_s28 = smov 128   ;;  %s522_s29 = smov 8  }
  0x2d   : > { %347 = dma.hbm_to_vmem [thread:$0]  (!%p616_p0), %s610_s30, 256, %s612_s4, %s621_s6, %s521_s28, %s521_s28, %s522_s29  }
  0x2e   : > { %p157_p12 = scmp.lt.s32.totalorder %s518_s14, 3  ;;  %p730_p1 = scmp.ge.s32.totalorder %s518_s14, 1 }
  0x30   : > { %p158_p3 = pnand %p730_p1, %p157_p12 }
  0x31   : > { %s653_s3 = sand.u32 (!%p158_p3), 1, %s502_s10  }
  0x32   : > { %161 = sbr.rel (%p158_p3) target bundleno = 87 (0x57), region = 28  ;;  %s330_s7 = sshll.u32 (!%p158_p3), %s653_s3, 4 }
  0x33   : > { %s164_s8 = scalar_lea.sflag (!%p158_p3), [#allocation3], %s653_s3  ;;  %s167_s15 = scalar_lea.vmem (!%p158_p3), [#allocation2], %s330_s7 }
  0x39   : > { %489 = dma.done.wait (%p588_p8), %s164_s8, 256  }
  0x3a   : > { %491 = vsyncadd (%p588_p8), %s164_s8, 4294967040  ;;  %p192_p9 = scmp.lt.s32.totalorder %s510_s12, 1  ;;  %s190_s4 = scalar_lea.vmem [#allocation5], %s330_s7  ;;  %v196_v0 = vld [vmem:[%s167_s15] sm:$0xff]  ;;  %vm207_vm0 = vcmask 130048   ;;  %v197_v2 = vld [vmem:[%s167_s15 + $0x8] sm:$0xff] }
  0x3b   : > { %s226_s5 = sshll.u32 %s190_s4, 4  ;;  %s339_s19 = sshll.u32 %s510_s12, 8  ;;  %s667_s5 = int_to_ptr.vmem [resolvable:$true] %s226_s5 }
  0x3c   : > { %s193_s30 = scalar_select %p192_p9, %s510_s12, 1 }
  0x3d   : > { %s672_s25 = scalar_lea.hbm %s723_s2, %s339_s19  ;;  %s211_s26 = scalar_lea.sflag [#allocation4], %s653_s3 }
  0x3e   : > { %s194_s18 = scalar_lea.vmem %s722_s1, %s193_s30  ;;  %s436_s12 = scalar_lea.vmem %s667_s5, 256 }
  0x3f   : > { %v332_v1 = vld [vmem:[%s194_s18] ss:$0 sm:$0xff]  ;;  %p437_p8 = scmp.ne.s32.totalorder %s667_s5, %s436_s12  ;;  %p731_p11 = scmp.ne.s32.totalorder %s727_s22, 0 }
  0x40   : > { %v205_v3 = vadd.f32 %v332_v1, %v196_v0  ;;  %v206_v4 = vadd.f32 %v332_v1, %v197_v2  ;;  %s523_s27 = smov [#allocation5]  }
  0x41   : > { %p438_p0 = pnand %p437_p8, %p731_p11  ;;  %s440_s28 = sshll.u32 %s523_s27, 4  ;;  %s441_s28 = int_to_ptr.vmem [resolvable:$false] %s440_s28 }
  0x42   : > { %208 = vst.msk [vmem:[%s190_s4] sm:$0xff] %vm207_vm0, %v205_v3  ;;  %209 = vst.msk [vmem:[%s190_s4 + $0x8] sm:$0xff] %vm207_vm0, %v206_v4  ;;  %s442_s29 = scalar_lea.vmem %s441_s28, 512  ;;  %p443_p13 = scmp.lt.s32.totalorder %s667_s5, %s441_s28 }
  0x43   : > { %p439_p6 = pneg %p438_p0  ;;  %p444_p2 = scmp.lt.s32.totalorder %s442_s29, %s436_s12 }
  0x45   : > { %p445_p5 = por %p444_p2, %p443_p13 }
  0x47   : > { %p446_p4 = pnand %p445_p5, %p439_p6 }
  0x49   : > { %449 = shalt.err (!%p446_p4)
}
  0x4a   : > { %s450_s7 = scalar_lea.hbm %s672_s25, 256  ;;  %s454_s30 = scalar_lea.hbm %s723_s2, 512 }
  0x4b   : > { %p451_p7 = scmp.ne.s32.totalorder %s672_s25, %s450_s7  ;;  %p455_p1 = scmp.lt.u32.totalorder %s672_s25, %s723_s2 }
  0x4c   : > { %p456_p3 = scmp.lt.u32.totalorder %s454_s30, %s450_s7  ;;  %p458_p8 = scmp.lt.u32.totalorder %s450_s7, %s672_s25 }
  0x4d   : > { %p452_p10 = pnand %p451_p7, %p731_p11 }
  0x4e   : > { %p457_p9 = por %p456_p3, %p455_p1 }
  0x4f   : > { %p453_p12 = pneg %p452_p10 }
  0x50   : > { %p459_p0 = por %p458_p8, %p457_p9 }
  0x52   : > { %p460_p6 = pnand %p459_p0, %p453_p12 }
  0x54   : > { %463 = shalt.err (!%p460_p6)
}
  0x55   : > { %s524_s16 = smov 128   ;;  %s525_s18 = smov 8  }
  0x56   : > { %342 = dma.vmem_to_hbm [thread:$0]  (%p731_p11), %s667_s5, 256, %s672_s25, %s211_s26, %s524_s16, %s524_s16, %s525_s18  }
  0x57 PF: > { %s241_s19 = sand.u32 1, %s498_s9   ;;  %p732_p13 = scmp.ne.s32.totalorder %s728_s24, 0 }
  0x58   : > { %p733_p2 = scmp.ge.s32.totalorder %s518_s14, 2  ;;  %s242_s21 = scalar_lea.sflag [#allocation4], %s241_s19 }
  0x5a   : > { %p349_p5 = pnand %p733_p2, %p732_p13 }
  0x5c   : > { %493 = dma.done.wait (!%p349_p5), %s242_s21, 256  }
  0x5d   : > { %495 = vsyncadd (!%p349_p5), %s242_s21, 4294967040  ;;  %s18_s14 = sadd.s32 1, %s518_s14   ;;  %s734_s9 = smov %s502_s10 }
  0x5e   : > { %p15_p4 = scmp.ge.s32.totalorder %s18_s14, 4   ;;  %s735_s10 = smov %s506_s11 }
  0x5f   : > { %s736_s11 = smov %s597_s23  ;;  %s737_s12 = smov %s514_s13 }
  0x60   : > { %s738_s13 = smov %s740_s17  ;;  %17 = sbr.rel (!%p15_p4) target bundleno = 6 (0x6), region = 76 }
  0x67   :  { %247 = vsyncpa [#allocation3], 1 }
  0x68   :  { %249 = vsyncpa [#allocation3 + $0x1], 1 }
  0x69   :  { %250 = vsyncpa [#allocation4], 1 }
  0x6a   :  { %252 = vsyncpa [#allocation4 + $0x1], 1 }

// kernel: poisson_noise_ring.4
= control target key start
LH: loop header
LB: loop body
LE: loop exit
PB: predicated region body
PF: predicated region fallthrough
CT: control target
= control target key end

     0   :  { %10 = vsyncpa [#allocation4], 0  ;;  %s332_s0 = inlined_call_operand.vmem [shape: f32[3], index: 0, kind: input, shape index: {}]   ;;  %s333_s1 = inlined_call_operand.vmem [shape: f32[32,16], index: 1, kind: input, shape index: {}]   ;;  %s334_s2 = inlined_call_operand.vmem [shape: f32[32,16], index: 2, kind: input, shape index: {}]   ;;  %s335_s3 = inlined_call_operand.hbm [shape: f32[32,16], index: 3, kind: output, shape index: {0}]   ;;  %s336_s4 = inlined_call_operand.vmem [shape: f32[1,8,128], index: 4, kind: output, shape index: {1}]  }
   0x1   :  { %11 = vsyncpa [#allocation3], 0  ;;  %s18_s17 = sshll.u32 %s332_s0, 4  ;;  %s19_s17 = int_to_ptr.vmem [resolvable:$true] %s18_s17 }
   0x2   :  { %s211_s18 = scalar_lea.vmem %s19_s17, 16  ;;  %p216_p1 = scmp.lt.s32.totalorder %s19_s17, %s19_s17 }
   0x3   :  { %p212_p0 = scmp.ne.s32.totalorder %s19_s17, %s211_s18  ;;  %p217_p2 = scmp.lt.s32.totalorder %s211_s18, %s211_s18 }
   0x5   :  { %p218_p3 = por %p217_p2, %p216_p1 }
   0x7   :  { %p219_p4 = pnand %p218_p3, %p212_p0 }
   0x9   :  { %222 = shalt.err (!%p219_p4)
}
   0xa   :  { %s249_s19 = smov [#allocation2]  }
   0xb   :  { %21 = dma.vmem_to_smem %s19_s17, 16, %s249_s19, [#allocation4]  }
   0xc   :  { %245 = dma.done.wait [#allocation4], 16  }
   0xd   :  { %246 = vsyncadd [#allocation4], 4294967280 }
   0xe   :  { %29 = sfence }
   0xf   :  { %s30_s20 = sld [smem:[#allocation2]]  ;;  %v33_v0 = vld [vmem:[%s333_s1] sm:$0xff]  ;;  %v34_v1 = vld [vmem:[%s333_s1 + $0x8] sm:$0xff]  ;;  %v35_v2 = vld [vmem:[%s333_s1 + $0x10] sm:$0xff]  ;;  %s186_s10 = sld [smem:[#allocation2 + $0x2]]  ;;  %vm104_vm0 = vcmask 130048  }
  0x10   :  { %v36_v3 = vld [vmem:[%s333_s1 + $0x18] sm:$0xff]  ;;  %v63_v14 = vld [vmem:[%s334_s2] sm:$0xff]  ;;  %v64_v18 = vld [vmem:[%s334_s2 + $0x8] sm:$0xff]  ;;  %s250_s11 = smov [#allocation5]  }
  0x11   :  { %v65_v22 = vld [vmem:[%s334_s2 + $0x10] sm:$0xff]  ;;  %v66_v27 = vld [vmem:[%s334_s2 + $0x18] sm:$0xff]  ;;  %s185_s2 = sld [smem:[#allocation2 + $0x1]]  ;;  %s169_s12 = sshll.u32 %s250_s11, 4  ;;  %s170_s12 = int_to_ptr.vmem [resolvable:$true] %s169_s12 }
  0x12   :  { %s223_s13 = scalar_lea.vmem %s170_s12, 512  ;;  %p228_p6 = scmp.lt.s32.totalorder %s170_s12, %s170_s12 }
  0x13   :  { %p224_p5 = scmp.ne.s32.totalorder %s170_s12, %s223_s13  ;;  %p229_p7 = scmp.lt.s32.totalorder %s223_s13, %s223_s13 }
  0x15   :  { %s37_s28 = smul.f32 -0.5, %s30_s20  ;;  %p230_p8 = por %p229_p7, %p228_p6 }
  0x17   :  { %v38_v4 = vstv %s37_s28  ;;  %v99_v58 = vstv %s185_s2  ;;  %p231_p9 = pnand %p230_p8, %p224_p5 }
  0x18   :  { %v39_v5 = vmul.f32 %v38_v4, %v33_v0  ;;  %v40_v6 = vmul.f32 %v38_v4, %v34_v1  ;;  %v41_v7 = vmul.f32 %v38_v4, %v35_v2  ;;  %v42_v8 = vmul.f32 %v38_v4, %v36_v3 }
  0x19   :  { %v109_v0 = vstv %s186_s10 }
  0x1a   :  { %v43_v9 = vmul.f32 1.442695, %v39_v5  ;;  %v45_v10 = vmul.f32 1.442695, %v40_v6  ;;  %v47_v11 = vmul.f32 1.442695, %v41_v7 }
  0x1b   :  { %v49_v12 = vmul.f32 1.442695, %v42_v8 }
  0x1c   :  { %195 = vpow2.f32 %v43_v9 }
  0x1d   :  { %197 = vpow2.f32 %v45_v10 }
  0x1e   :  { %199 = vpow2.f32 %v47_v11 }
  0x1f   :  { %201 = vpow2.f32 %v49_v12 }
  0x26   :  { %v196_v13 = vpop.eup %195 }
  0x27   :  { %v198_v15 = vpop.eup %197  ;;  %v51_v16 = vmul.f32 %v196_v13, %v196_v13  ;;  %v59_v17 = vmul.f32 100.0, %v196_v13 }
  0x28   :  { %v200_v19 = vpop.eup %199  ;;  %v52_v20 = vmul.f32 %v198_v15, %v198_v15  ;;  %v60_v21 = vmul.f32 100.0, %v198_v15 }
  0x29   :  { %v202_v23 = vpop.eup %201  ;;  %v53_v24 = vmul.f32 %v200_v19, %v200_v19  ;;  %v55_v25 = vmul.f32 10000.0, %v51_v16  ;;  %v61_v26 = vmul.f32 100.0, %v200_v19  ;;  %v67_v28 = vmul.f32 %v63_v14, %v59_v17 }
  0x2a   :  { %v54_v29 = vmul.f32 %v202_v23, %v202_v23  ;;  %v56_v30 = vmul.f32 10000.0, %v52_v20  ;;  %v62_v31 = vmul.f32 100.0, %v202_v23  ;;  %v68_v32 = vmul.f32 %v64_v18, %v60_v21 }
  0x2b   :  { %v57_v33 = vmul.f32 10000.0, %v53_v24  ;;  %v69_v34 = vmul.f32 %v65_v22, %v61_v26  ;;  %v71_v35 = vadd.f32 %v67_v28, %v55_v25 }
  0x2c   :  { %v58_v36 = vmul.f32 10000.0, %v54_v29  ;;  %v70_v37 = vmul.f32 %v66_v27, %v62_v31  ;;  %v72_v38 = vadd.f32 %v68_v32, %v56_v30 }
  0x2d   :  { %v73_v39 = vadd.f32 %v69_v34, %v57_v33  ;;  %v75_v40 = vadd.f32 0.5, %v71_v35 }
  0x2e   :  { %v74_v41 = vadd.f32 %v70_v37, %v58_v36  ;;  %v76_v42 = vadd.f32 0.5, %v72_v38 }
  0x2f   :  { %v77_v43 = vadd.f32 0.5, %v73_v39  ;;  %v79_v44 = vfloor.f32 %v75_v40 }
  0x30   :  { %v78_v45 = vadd.f32 0.5, %v74_v41  ;;  %v80_v46 = vfloor.f32 %v76_v42 }
  0x31   :  { %v81_v47 = vfloor.f32 %v77_v43  ;;  %v83_v48 = vmax.f32 %v79_v44, 1.0 }
  0x32   :  { %v82_v49 = vfloor.f32 %v78_v45  ;;  %v84_v50 = vmax.f32 %v80_v46, 1.0 }
  0x33   :  { %v85_v51 = vmax.f32 %v81_v47, 1.0  ;;  %203 = vlog2.f32 %v83_v48 }
  0x34   :  { %v86_v52 = vmax.f32 %v82_v49, 1.0  ;;  %205 = vlog2.f32 %v84_v50 }
  0x35   :  { %207 = vlog2.f32 %v85_v51 }
  0x36   :  { %209 = vlog2.f32 %v86_v52 }
  0x3d   :  { %v204_v53 = vpop.eup %203 }
  0x3e   :  { %v206_v54 = vpop.eup %205  ;;  %v88_v55 = vmul.f32 0.6931472, %v204_v53 }
  0x3f   :  { %v208_v56 = vpop.eup %207  ;;  %v90_v57 = vmul.f32 0.6931472, %v206_v54 }
  0x40   :  { %v210_v59 = vpop.eup %209  ;;  %v92_v60 = vmul.f32 0.6931472, %v208_v56  ;;  %v95_v61 = vsub.f32 9.2103405, %v88_v55 }
  0x41   :  { %v94_v62 = vmul.f32 0.6931472, %v210_v59  ;;  %v96_v63 = vsub.f32 9.2103405, %v90_v57 }
  0x42   :  { %v97_v1 = vsub.f32 9.2103405, %v92_v60  ;;  %v100_v2 = vmul.f32 %v99_v58, %v95_v61 }
  0x43   :  { %v98_v3 = vsub.f32 9.2103405, %v94_v62  ;;  %v101_v4 = vmul.f32 %v99_v58, %v96_v63 }
  0x44   :  { %v102_v5 = vmul.f32 %v99_v58, %v97_v1  ;;  %v110_v6 = vsub.f32 %v100_v2, %v109_v0  ;;  %105 = vst.msk [vmem:[#allocation5] sm:$0xff] %vm104_vm0, %v100_v2 }
  0x45   :  { %v103_v7 = vmul.f32 %v99_v58, %v98_v3  ;;  %106 = vst.msk [vmem:[#allocation5 + $0x8] sm:$0xff] %vm104_vm0, %v101_v4  ;;  %v111_v8 = vsub.f32 %v101_v4, %v109_v0 }
  0x46   :  { %107 = vst.msk [vmem:[#allocation5 + $0x10] sm:$0xff] %vm104_vm0, %v102_v5  ;;  %v112_v9 = vsub.f32 %v102_v5, %v109_v0  ;;  %v114_v10 = vsel %vm104_vm0, %v110_v6, 0.0  ;;  %v130_v11 = vmul.f32 %v110_v6, %v110_v6 }
  0x47   :  { %108 = vst.msk [vmem:[#allocation5 + $0x18] sm:$0xff] %vm104_vm0, %v103_v7  ;;  %v113_v12 = vsub.f32 %v103_v7, %v109_v0  ;;  %v115_v13 = vsel %vm104_vm0, %v111_v8, 0.0  ;;  %v131_v14 = vmul.f32 %v111_v8, %v111_v8 }
  0x48   :  { %v116_v15 = vadd.f32 %v115_v13, %v114_v10  ;;  %v117_v16 = vsel %vm104_vm0, %v112_v9, 0.0  ;;  %v132_v17 = vmul.f32 %v112_v9, %v112_v9  ;;  %v134_v18 = vsel %vm104_vm0, %v130_v11, 0.0 }
  0x49   :  { %v119_v19 = vsel %vm104_vm0, %v113_v12, 0.0  ;;  %v133_v20 = vmul.f32 %v113_v12, %v113_v12  ;;  %v135_v21 = vsel %vm104_vm0, %v131_v14, 0.0 }
  0x4a   :  { %v118_v22 = vadd.f32 %v117_v16, %v116_v15  ;;  %v136_v23 = vadd.f32 %v135_v21, %v134_v18  ;;  %v137_v24 = vsel %vm104_vm0, %v132_v17, 0.0 }
  0x4b   :  { %v139_v25 = vsel %vm104_vm0, %v133_v20, 0.0 }
  0x4c   :  { %v120_v26 = vadd.f32 %v119_v19, %v118_v22  ;;  %v138_v27 = vadd.f32 %v137_v24, %v136_v23 }
  0x4e   :  { %121 = vadd.xlane.f32.xlu0 %v120_v26  ;;  %v140_v28 = vadd.f32 %v139_v25, %v138_v27 }
  0x52   :  { %141 = vadd.xlane.f32.xlu0 %v140_v28 }
  0x53   :  { %234 = shalt.err (!%p231_p9)
}
  0x54   :  { %s235_s16 = scalar_lea.hbm %s335_s3, 512 }
  0x55   :  { %p236_p10 = scmp.ne.s32.totalorder %s335_s3, %s235_s16  ;;  %p239_p11 = scmp.lt.u32.totalorder %s235_s16, %s335_s3 }
  0x57   :  { %p241_p12 = pnand %p239_p11, %p236_p10 }
  0x59   :  { %244 = shalt.err (!%p241_p12)
}
  0x5a   :  { %s251_s21 = smov 128   ;;  %s252_s22 = smov 8   ;;  %v150_v43 = vlaneseq }
  0x5b   :  { %175 = dma.vmem_to_hbm [thread:$0]  %s170_s12, 512, %s335_s3, [#allocation3], %s251_s21, %s251_s21, %s252_s22  }
  0x5c   :  { %v151_v44 = vshrl.u32 %v150_v43, 7  ;;  %v153_v45 = vand.u32 127, %v150_v43 }
  0x5e   :  { %vm154_vm1 = vcmp.eq.s32.totalorder %v151_v44, 0  ;;  %vm157_vm2 = vcmp.eq.s32.totalorder %v153_v45, 1  ;;  %vm155_vm3 = vcmp.eq.s32.totalorder %v153_v45, 0 }
  0x5f   :  { %vm158_vm4 = vmand %vm154_vm1, %vm157_vm2 }
  0x60   :  { %vm156_vm5 = vmand %vm154_vm1, %vm155_vm3 }
  0xdb   :  { %v122_v29 = vpop.xlane.xlu0 %121 }
  0xdc   :  { %v123_v30 = vrot.slane %v122_v29, 4 }
  0xde   :  { %v124_v31 = vadd.f32 %v123_v30, %v122_v29 }
  0xdf   :  { %v142_v32 = vpop.xlane.xlu0 %141 }
  0xe0   :  { %v125_v33 = vrot.slane %v124_v31, 2  ;;  %v143_v34 = vrot.slane %v142_v32, 4 }
  0xe2   :  { %v144_v35 = vadd.f32 %v143_v34, %v142_v32  ;;  %v126_v36 = vadd.f32 %v125_v33, %v124_v31 }
  0xe4   :  { %v145_v37 = vrot.slane %v144_v35, 2  ;;  %v127_v38 = vrot.slane %v126_v36, 1 }
  0xe6   :  { %v146_v39 = vadd.f32 %v145_v37, %v144_v35  ;;  %v128_v40 = vadd.f32 %v127_v38, %v126_v36 }
  0xe8   :  { %187 = vpush %v128_v40  ;;  %v147_v41 = vrot.slane %v146_v39, 1 }
  0xea   :  { %v148_v42 = vadd.f32 %v147_v41, %v146_v39 }
  0xec   :  { %189 = vpush %v148_v42 }
 0x119   :  { %s188_s3 = spop %187 }
 0x11a   :  { %v161_v47 = vstv %s188_s3 }
 0x11d   :  { %s190_s24 = spop %189 }
 0x11e   :  { %v159_v46 = vstv %s190_s24 }
 0x11f   :  { %v160_v48 = vsel %vm158_vm4, %v159_v46, 0.0 }
 0x120   :  { %v162_v49 = vsel %vm156_vm5, %v161_v47, %v160_v48 }
 0x121   :  { %163 = vst [vmem:[%s336_s4] sm:$0xff] %v162_v49 }
 0x122   :  { %247 = dma.done.wait [#allocation3], 512  }
 0x123   :  { %248 = vsyncadd [#allocation3], 4294966784 }
 0x124   :  { %183 = vsyncpa [#allocation3], 1 }
 0x125   :  { %184 = vsyncpa [#allocation4], 1 }

</bundles_post_ra>
